<compile_context>
chip_gen: v7x
topology: tpu7x:2x2x1
jax: 0.10.0
libtpu: 0.0.40
codegen_flags: <defaults>
</compile_context>

<pallas_src>
import functools
import math

import jax
import jax.numpy as jnp
from jax.experimental import pallas as pl
from jax.experimental.pallas import tpu as pltpu


def _silu(x):
    return x * jax.nn.sigmoid(x)


def _activation_dtype():
    """bf16 elementwise math on v6e/v7x (bf16 VPU/EUP); f32 elsewhere."""
    try:
        kind = jax.devices()[0].device_kind.lower()
    except Exception:
        return jnp.float32
    if ("v6" in kind) or ("v7" in kind) or ("7x" in kind):
        return jnp.bfloat16
    return jnp.float32


# ----------------------------------------------------------------------------
# Kernel
# ----------------------------------------------------------------------------
def mlp_kernel(x_ref, w_in_ref, w_trunk_ref, w_heads_ref, b_ref, out_ref, *,
               out_features, act_dtype):
    # x_ref:       (TM, IN)      f32    (cast to bf16 in-kernel)
    # w_in_ref:    (IN, 128)     bf16   (trunk layer 1, cols 64:128 zero-pad)
    # w_trunk_ref: (4, 128, 128) bf16   (trunk layers 2-5, zero-padded)
    # w_heads_ref: (3, 128, 128) bf16   (fused block-diagonal policy|value heads)
    # b_ref:       (8, 128)      f32    (rows 0-4 trunk, 5-7 fused head biases)
    # out_ref:     (TM, 128)     f32    (policy lanes [0:out), value lane [out],
    #                                    value tanh applied in the wrapper)
    del out_features  # layout handled in wrapper; kept for signature clarity
    x = x_ref[...].astype(jnp.bfloat16)          # in-kernel cast (x read once at f32)
    b = b_ref[...]                               # (8, 128) f32

    # ---- trunk layer 1: Linear + SiLU ----
    h = jnp.dot(x, w_in_ref[...], preferred_element_type=jnp.float32)
    h = _silu((h + b[0:1]).astype(act_dtype))

    # ---- trunk layers 2-5: SiLU after 2,3,4; none after 5 ----
    for i in range(4):
        h = jnp.dot(h.astype(jnp.bfloat16), w_trunk_ref[i],
                    preferred_element_type=jnp.float32)
        h = (h + b[1 + i:2 + i]).astype(act_dtype)
        if i < 3:
            h = _silu(h)
    # padded lanes [64:128) of h are exactly zero by construction.

    lanes = jax.lax.broadcasted_iota(jnp.int32, h.shape, 1)  # (TM, 128)

    # ---- fused heads, layer 1: policy lanes [0:32) ReLU, value lanes [32:64) tanh
    a = jnp.dot(h.astype(jnp.bfloat16), w_heads_ref[0],
                preferred_element_type=jnp.float32)
    a = (a + b[5:6]).astype(act_dtype)
    a = jnp.where(lanes < 32, jnp.maximum(a, 0), jnp.tanh(a))

    # ---- fused heads, layer 2: policy lanes [0:16) ReLU, value lanes [16:32) tanh
    a = jnp.dot(a.astype(jnp.bfloat16), w_heads_ref[1],
                preferred_element_type=jnp.float32)
    a = (a + b[6:7]).astype(act_dtype)
    a = jnp.where(lanes < 16, jnp.maximum(a, 0), jnp.tanh(a))

    # ---- fused heads, layer 3: purely linear; value-lane tanh is done in the
    #      wrapper on the (B, 1) slice (saves a full-width EUP tanh pass).
    o = jnp.dot(a.astype(jnp.bfloat16), w_heads_ref[2],
                preferred_element_type=jnp.float32) + b[7:8]

    out_ref[...] = o.astype(out_ref.dtype)


# ----------------------------------------------------------------------------
# Wrapper
# ----------------------------------------------------------------------------
@functools.partial(jax.jit, static_argnames=("out_features",))
def mlp_network_forward(x, packed, out_features):
    """x: (B, C, H, W) f32. packed: (w_in, w_trunk, w_heads, b_all)."""
    w_in, w_trunk, w_heads, b_all = packed
    B = x.shape[0]
    x_flat = x.reshape(B, -1)                      # nn.Flatten only; stays f32
    in_features = x_flat.shape[1]

    act_dtype = _activation_dtype()                # trace-time, baked in

    # Batch tile: big tiles amortize per-grid-step overhead. Cap so the
    # double-buffered f32 x tile stays within ~24 MiB (fits every generation,
    # incl. v7x's 64 MiB VMEM, with the 48 MiB scoped limit below).
    budget = 24 << 20
    tm_cap = max(8, (budget // (2 * in_features * 4)) // 8 * 8)
    TM = min(1024, tm_cap)
    if B <= TM:
        TM = B                                     # single full-dim block
    # NOTE: when B > TM the grid has >= 2 steps, so the "parallel" axis can be
    # split across the 2 TensorCores on v7x.
    grid = (pl.cdiv(B, TM),)                       # no jnp.pad copy of x;
                                                   # last block over-reads and
                                                   # partial out-writes are masked

    kernel = functools.partial(mlp_kernel, out_features=out_features,
                               act_dtype=act_dtype)

    out = pl.pallas_call(
        kernel,
        out_shape=jax.ShapeDtypeStruct((B, 128), jnp.float32),
        grid_spec=pltpu.PrefetchScalarGridSpec(
            num_scalar_prefetch=0,
            grid=grid,
            in_specs=[
                pl.BlockSpec((TM, in_features), lambda i: (i, 0)),
                pl.BlockSpec((in_features, 128), lambda i: (0, 0)),
                pl.BlockSpec((4, 128, 128), lambda i: (0, 0, 0)),
                pl.BlockSpec((3, 128, 128), lambda i: (0, 0, 0)),
                pl.BlockSpec((8, 128), lambda i: (0, 0)),
            ],
            out_specs=pl.BlockSpec((TM, 128), lambda i: (i, 0)),
        ),
        compiler_params=pltpu.CompilerParams(
            dimension_semantics=("parallel",),     # megacore split on v7x
            vmem_limit_bytes=48 << 20,             # > v5e's 16 MiB default,
                                                   # < v7x's 64 MiB physical
        ),
    )(x_flat, w_in, w_trunk, w_heads, b_all)

    policy = out[:, :out_features]
    value = jnp.tanh(out[:, out_features:out_features + 1])  # final value tanh
    return policy, value


# ----------------------------------------------------------------------------
# Parameters (raw PyTorch-like layout) and packing into the kernel layout
# ----------------------------------------------------------------------------
def init_raw_params(key, in_features, out_features):
    """Per-layer (W, b) with W stored (in, out) so x @ W + b == PyTorch x @ W.T + b."""
    dims = [
        (in_features, 64), (64, 64), (64, 64), (64, 64), (64, 64),   # trunk
        (64, 32), (32, 16), (16, out_features),                       # policy head
        (64, 32), (32, 16), (16, 1),                                  # value head
    ]
    raw = []
    for din, dout in dims:
        key, wk, bk = jax.random.split(key, 3)
        bound = 1.0 / math.sqrt(din)
        w = jax.random.uniform(wk, (din, dout), jnp.float32, -bound, bound)
        b = jax.random.uniform(bk, (dout,), jnp.float32, -bound, bound)
        raw.append((w, b))
    return raw


def pack_params(raw, in_features, out_features):
    assert out_features + 1 <= 128, "fused output packing assumes out_features < 128"
    ws = [p[0] for p in raw]
    bs = [p[1] for p in raw]

    def pad2(a, rows, cols):
        return jnp.pad(a, ((0, rows - a.shape[0]), (0, cols - a.shape[1])))

    # trunk
    w_in = pad2(ws[0], in_features, 128).astype(jnp.bfloat16)            # (IN,128)
    w_trunk = jnp.stack([pad2(w, 128, 128) for w in ws[1:5]]).astype(jnp.bfloat16)

    # fused block-diagonal heads (policy | value), padded to (128,128)
    h1 = jnp.zeros((128, 128), jnp.float32)
    h1 = h1.at[:64, 0:32].set(ws[5]).at[:64, 32:64].set(ws[8])
    h2 = jnp.zeros((128, 128), jnp.float32)
    h2 = h2.at[0:32, 0:16].set(ws[6]).at[32:64, 16:32].set(ws[9])
    h3 = jnp.zeros((128, 128), jnp.float32)
    h3 = h3.at[0:16, 0:out_features].set(ws[7])
    h3 = h3.at[16:32, out_features:out_features + 1].set(ws[10])
    w_heads = jnp.stack([h1, h2, h3]).astype(jnp.bfloat16)

    # all biases in one (8,128) f32 array
    b_all = jnp.zeros((8, 128), jnp.float32)
    for i in range(5):
        b_all = b_all.at[i, 0:64].set(bs[i])
    b_all = b_all.at[5, 0:32].set(bs[5]).at[5, 32:64].set(bs[8])
    b_all = b_all.at[6, 0:16].set(bs[6]).at[6, 16:32].set(bs[9])
    b_all = b_all.at[7, 0:out_features].set(bs[7])
    b_all = b_all.at[7, out_features:out_features + 1].set(bs[10])

    return w_in, w_trunk, w_heads, b_all


def reference_forward(x, raw, out_features):
    """Pure-JAX f32 reference matching the PyTorch module."""
    B = x.shape[0]
    ws = [p[0] for p in raw]
    bs = [p[1] for p in raw]
    h = x.reshape(B, -1)
    h = _silu(h @ ws[0] + bs[0])
    h = _silu(h @ ws[1] + bs[1])
    h = _silu(h @ ws[2] + bs[2])
    h = _silu(h @ ws[3] + bs[3])
    h = h @ ws[4] + bs[4]
    p = jnp.maximum(h @ ws[5] + bs[5], 0.0)
    p = jnp.maximum(p @ ws[6] + bs[6], 0.0)
    p = p @ ws[7] + bs[7]
    v = jnp.tanh(h @ ws[8] + bs[8])
    v = jnp.tanh(v @ ws[9] + bs[9])
    v = jnp.tanh(v @ ws[10] + bs[10])
    return p, v


if __name__ == "__main__":
    B, C, H, W = 2, 4, 16, 16
    OUT_FEATURES = 6

    key = jax.random.PRNGKey(0)
    kx, kp = jax.random.split(key)
    x = jax.random.normal(kx, (B, C, H, W), jnp.float32)

    raw = init_raw_params(kp, C * H * W, OUT_FEATURES)
    packed = pack_params(raw, C * H * W, OUT_FEATURES)

    policy, value = mlp_network_forward(x, packed, out_features=OUT_FEATURES)
    jax.block_until_ready((policy, value))

    assert policy.shape == (B, OUT_FEATURES)
    assert value.shape == (B, 1)

    # numerical check vs f32 reference (bf16-dot / bf16-activation tolerance)
    p_ref, v_ref = reference_forward(x, raw, OUT_FEATURES)
    assert jnp.allclose(policy, p_ref, atol=8e-2, rtol=8e-2), "policy mismatch"
    assert jnp.allclose(value, v_ref, atol=8e-2, rtol=8e-2), "value mismatch"

    print("KERNEL_OK")
</pallas_src>

<mosaic_0001>
module attributes {stable_mosaic.version = 11 : i64} {
  func.func @mlp_kernel(%arg0: i32, %arg1: memref<2x1024xf32, #tpu.memory_space<vmem>>, %arg2: memref<1024x128xbf16, #tpu.memory_space<vmem>>, %arg3: memref<4x128x128xbf16, #tpu.memory_space<vmem>>, %arg4: memref<3x128x128xbf16, #tpu.memory_space<vmem>>, %arg5: memref<8x128xf32, #tpu.memory_space<vmem>>, %arg6: memref<2x128xf32, #tpu.memory_space<vmem>>) attributes {dimension_semantics = [#tpu.dimension_semantics<parallel>], iteration_bounds = array<i64: 1>, scalar_prefetch = 0 : i64, scratch_operands = 0 : i64, tpu.core_type = #tpu.core_type<tc>, window_params = [{transform_indices = @transform_0, window_bounds = array<i64: 2, 1024>}, {pipeline_mode = #tpu.pipeline_mode<synchronous>, transform_indices = @transform_1, window_bounds = array<i64: 1024, 128>}, {pipeline_mode = #tpu.pipeline_mode<synchronous>, transform_indices = @transform_2, window_bounds = array<i64: 4, 128, 128>}, {pipeline_mode = #tpu.pipeline_mode<synchronous>, transform_indices = @transform_3, window_bounds = array<i64: 3, 128, 128>}, {pipeline_mode = #tpu.pipeline_mode<synchronous>, transform_indices = @transform_4, window_bounds = array<i64: 8, 128>}, {transform_indices = @transform_5, window_bounds = array<i64: 2, 128>}]} {
    %c0 = arith.constant 0 : index
    %c0_0 = arith.constant 0 : index
    %0 = vector.load %arg1[%c0, %c0_0] : memref<2x1024xf32, #tpu.memory_space<vmem>>, vector<2x1024xf32>
    %1 = arith.truncf %0 : vector<2x1024xf32> to vector<2x1024xbf16>
    %c0_1 = arith.constant 0 : index
    %c0_2 = arith.constant 0 : index
    %2 = vector.load %arg5[%c0_1, %c0_2] : memref<8x128xf32, #tpu.memory_space<vmem>>, vector<8x128xf32>
    %c0_3 = arith.constant 0 : index
    %c0_4 = arith.constant 0 : index
    %3 = vector.load %arg2[%c0_3, %c0_4] : memref<1024x128xbf16, #tpu.memory_space<vmem>>, vector<1024x128xbf16>
    %cst = arith.constant dense<0.000000e+00> : vector<2x128xf32>
    %4 = tpu.matmul %1, %3, %cst {dimension_numbers = #tpu.dot_dimension_numbers<[1], [0], [0], [1], [0, 0, 1, 1], [], []>} : vector<2x1024xbf16>, vector<1024x128xbf16>, vector<2x128xf32> -> vector<2x128xf32>
    %5 = vector.extract_strided_slice %2 {offsets = [0, 0], sizes = [1, 128], strides = [1, 1]} : vector<8x128xf32> to vector<1x128xf32>
    %6 = vector.broadcast %5 : vector<1x128xf32> to vector<2x128xf32>
    %7 = arith.addf %4, %6 : vector<2x128xf32>
    %8 = arith.negf %7 : vector<2x128xf32>
    %9 = math.exp %8 : vector<2x128xf32>
    %cst_5 = arith.constant 1.000000e+00 : f32
    %10 = vector.broadcast %cst_5 : f32 to vector<2x128xf32>
    %11 = arith.addf %10, %9 : vector<2x128xf32>
    %12 = arith.divf %10, %11 : vector<2x128xf32>
    %13 = arith.mulf %7, %12 : vector<2x128xf32>
    %14 = arith.truncf %13 : vector<2x128xf32> to vector<2x128xbf16>
    %c0_6 = arith.constant 0 : index
    %c0_7 = arith.constant 0 : index
    %c0_8 = arith.constant 0 : index
    %15 = vector.load %arg3[%c0_6, %c0_7, %c0_8] : memref<4x128x128xbf16, #tpu.memory_space<vmem>>, vector<1x128x128xbf16>
    %16 = vector.shape_cast %15 : vector<1x128x128xbf16> to vector<128x128xbf16>
    %cst_9 = arith.constant dense<0.000000e+00> : vector<2x128xf32>
    %17 = tpu.matmul %14, %16, %cst_9 {dimension_numbers = #tpu.dot_dimension_numbers<[1], [0], [0], [1], [0, 0, 1, 1], [], []>} : vector<2x128xbf16>, vector<128x128xbf16>, vector<2x128xf32> -> vector<2x128xf32>
    %18 = vector.extract_strided_slice %2 {offsets = [1, 0], sizes = [1, 128], strides = [1, 1]} : vector<8x128xf32> to vector<1x128xf32>
    %19 = vector.broadcast %18 : vector<1x128xf32> to vector<2x128xf32>
    %20 = arith.addf %17, %19 : vector<2x128xf32>
    %21 = arith.negf %20 : vector<2x128xf32>
    %22 = math.exp %21 : vector<2x128xf32>
    %cst_10 = arith.constant 1.000000e+00 : f32
    %23 = vector.broadcast %cst_10 : f32 to vector<2x128xf32>
    %24 = arith.addf %23, %22 : vector<2x128xf32>
    %25 = arith.divf %23, %24 : vector<2x128xf32>
    %26 = arith.mulf %20, %25 : vector<2x128xf32>
    %27 = arith.truncf %26 : vector<2x128xf32> to vector<2x128xbf16>
    %c1 = arith.constant 1 : index
    %c0_11 = arith.constant 0 : index
    %c0_12 = arith.constant 0 : index
    %28 = vector.load %arg3[%c1, %c0_11, %c0_12] : memref<4x128x128xbf16, #tpu.memory_space<vmem>>, vector<1x128x128xbf16>
    %29 = vector.shape_cast %28 : vector<1x128x128xbf16> to vector<128x128xbf16>
    %cst_13 = arith.constant dense<0.000000e+00> : vector<2x128xf32>
    %30 = tpu.matmul %27, %29, %cst_13 {dimension_numbers = #tpu.dot_dimension_numbers<[1], [0], [0], [1], [0, 0, 1, 1], [], []>} : vector<2x128xbf16>, vector<128x128xbf16>, vector<2x128xf32> -> vector<2x128xf32>
    %31 = vector.extract_strided_slice %2 {offsets = [2, 0], sizes = [1, 128], strides = [1, 1]} : vector<8x128xf32> to vector<1x128xf32>
    %32 = vector.broadcast %31 : vector<1x128xf32> to vector<2x128xf32>
    %33 = arith.addf %30, %32 : vector<2x128xf32>
    %34 = arith.negf %33 : vector<2x128xf32>
    %35 = math.exp %34 : vector<2x128xf32>
    %cst_14 = arith.constant 1.000000e+00 : f32
    %36 = vector.broadcast %cst_14 : f32 to vector<2x128xf32>
    %37 = arith.addf %36, %35 : vector<2x128xf32>
    %38 = arith.divf %36, %37 : vector<2x128xf32>
    %39 = arith.mulf %33, %38 : vector<2x128xf32>
    %40 = arith.truncf %39 : vector<2x128xf32> to vector<2x128xbf16>
    %c2 = arith.constant 2 : index
    %c0_15 = arith.constant 0 : index
    %c0_16 = arith.constant 0 : index
    %41 = vector.load %arg3[%c2, %c0_15, %c0_16] : memref<4x128x128xbf16, #tpu.memory_space<vmem>>, vector<1x128x128xbf16>
    %42 = vector.shape_cast %41 : vector<1x128x128xbf16> to vector<128x128xbf16>
    %cst_17 = arith.constant dense<0.000000e+00> : vector<2x128xf32>
    %43 = tpu.matmul %40, %42, %cst_17 {dimension_numbers = #tpu.dot_dimension_numbers<[1], [0], [0], [1], [0, 0, 1, 1], [], []>} : vector<2x128xbf16>, vector<128x128xbf16>, vector<2x128xf32> -> vector<2x128xf32>
    %44 = vector.extract_strided_slice %2 {offsets = [3, 0], sizes = [1, 128], strides = [1, 1]} : vector<8x128xf32> to vector<1x128xf32>
    %45 = vector.broadcast %44 : vector<1x128xf32> to vector<2x128xf32>
    %46 = arith.addf %43, %45 : vector<2x128xf32>
    %47 = arith.negf %46 : vector<2x128xf32>
    %48 = math.exp %47 : vector<2x128xf32>
    %cst_18 = arith.constant 1.000000e+00 : f32
    %49 = vector.broadcast %cst_18 : f32 to vector<2x128xf32>
    %50 = arith.addf %49, %48 : vector<2x128xf32>
    %51 = arith.divf %49, %50 : vector<2x128xf32>
    %52 = arith.mulf %46, %51 : vector<2x128xf32>
    %53 = arith.truncf %52 : vector<2x128xf32> to vector<2x128xbf16>
    %c3 = arith.constant 3 : index
    %c0_19 = arith.constant 0 : index
    %c0_20 = arith.constant 0 : index
    %54 = vector.load %arg3[%c3, %c0_19, %c0_20] : memref<4x128x128xbf16, #tpu.memory_space<vmem>>, vector<1x128x128xbf16>
    %55 = vector.shape_cast %54 : vector<1x128x128xbf16> to vector<128x128xbf16>
    %cst_21 = arith.constant dense<0.000000e+00> : vector<2x128xf32>
    %56 = tpu.matmul %53, %55, %cst_21 {dimension_numbers = #tpu.dot_dimension_numbers<[1], [0], [0], [1], [0, 0, 1, 1], [], []>} : vector<2x128xbf16>, vector<128x128xbf16>, vector<2x128xf32> -> vector<2x128xf32>
    %57 = vector.extract_strided_slice %2 {offsets = [4, 0], sizes = [1, 128], strides = [1, 1]} : vector<8x128xf32> to vector<1x128xf32>
    %58 = vector.broadcast %57 : vector<1x128xf32> to vector<2x128xf32>
    %59 = arith.addf %56, %58 : vector<2x128xf32>
    %60 = tpu.iota {dimensions = array<i32: 1>} : vector<2x128xi32>
    %61 = arith.truncf %59 : vector<2x128xf32> to vector<2x128xbf16>
    %c0_22 = arith.constant 0 : index
    %c0_23 = arith.constant 0 : index
    %c0_24 = arith.constant 0 : index
    %62 = vector.load %arg4[%c0_22, %c0_23, %c0_24] : memref<3x128x128xbf16, #tpu.memory_space<vmem>>, vector<1x128x128xbf16>
    %63 = vector.shape_cast %62 : vector<1x128x128xbf16> to vector<128x128xbf16>
    %cst_25 = arith.constant dense<0.000000e+00> : vector<2x128xf32>
    %64 = tpu.matmul %61, %63, %cst_25 {dimension_numbers = #tpu.dot_dimension_numbers<[1], [0], [0], [1], [0, 0, 1, 1], [], []>} : vector<2x128xbf16>, vector<128x128xbf16>, vector<2x128xf32> -> vector<2x128xf32>
    %65 = vector.extract_strided_slice %2 {offsets = [5, 0], sizes = [1, 128], strides = [1, 1]} : vector<8x128xf32> to vector<1x128xf32>
    %66 = vector.broadcast %65 : vector<1x128xf32> to vector<2x128xf32>
    %67 = arith.addf %64, %66 : vector<2x128xf32>
    %c32_i32 = arith.constant 32 : i32
    %68 = vector.broadcast %c32_i32 : i32 to vector<2x128xi32>
    %69 = arith.cmpi slt, %60, %68 : vector<2x128xi32>
    %cst_26 = arith.constant 0.000000e+00 : f32
    %70 = vector.broadcast %cst_26 : f32 to vector<2x128xf32>
    %71 = arith.maximumf %67, %70 : vector<2x128xf32>
    %72 = math.tanh %67 : vector<2x128xf32>
    %73 = arith.select %69, %71, %72 : vector<2x128xi1>, vector<2x128xf32>
    %74 = arith.truncf %73 : vector<2x128xf32> to vector<2x128xbf16>
    %c1_27 = arith.constant 1 : index
    %c0_28 = arith.constant 0 : index
    %c0_29 = arith.constant 0 : index
    %75 = vector.load %arg4[%c1_27, %c0_28, %c0_29] : memref<3x128x128xbf16, #tpu.memory_space<vmem>>, vector<1x128x128xbf16>
    %76 = vector.shape_cast %75 : vector<1x128x128xbf16> to vector<128x128xbf16>
    %cst_30 = arith.constant dense<0.000000e+00> : vector<2x128xf32>
    %77 = tpu.matmul %74, %76, %cst_30 {dimension_numbers = #tpu.dot_dimension_numbers<[1], [0], [0], [1], [0, 0, 1, 1], [], []>} : vector<2x128xbf16>, vector<128x128xbf16>, vector<2x128xf32> -> vector<2x128xf32>
    %78 = vector.extract_strided_slice %2 {offsets = [6, 0], sizes = [1, 128], strides = [1, 1]} : vector<8x128xf32> to vector<1x128xf32>
    %79 = vector.broadcast %78 : vector<1x128xf32> to vector<2x128xf32>
    %80 = arith.addf %77, %79 : vector<2x128xf32>
    %c16_i32 = arith.constant 16 : i32
    %81 = vector.broadcast %c16_i32 : i32 to vector<2x128xi32>
    %82 = arith.cmpi slt, %60, %81 : vector<2x128xi32>
    %cst_31 = arith.constant 0.000000e+00 : f32
    %83 = vector.broadcast %cst_31 : f32 to vector<2x128xf32>
    %84 = arith.maximumf %80, %83 : vector<2x128xf32>
    %85 = math.tanh %80 : vector<2x128xf32>
    %86 = arith.select %82, %84, %85 : vector<2x128xi1>, vector<2x128xf32>
    %87 = arith.truncf %86 : vector<2x128xf32> to vector<2x128xbf16>
    %c2_32 = arith.constant 2 : index
    %c0_33 = arith.constant 0 : index
    %c0_34 = arith.constant 0 : index
    %88 = vector.load %arg4[%c2_32, %c0_33, %c0_34] : memref<3x128x128xbf16, #tpu.memory_space<vmem>>, vector<1x128x128xbf16>
    %89 = vector.shape_cast %88 : vector<1x128x128xbf16> to vector<128x128xbf16>
    %cst_35 = arith.constant dense<0.000000e+00> : vector<2x128xf32>
    %90 = tpu.matmul %87, %89, %cst_35 {dimension_numbers = #tpu.dot_dimension_numbers<[1], [0], [0], [1], [0, 0, 1, 1], [], []>} : vector<2x128xbf16>, vector<128x128xbf16>, vector<2x128xf32> -> vector<2x128xf32>
    %91 = vector.extract_strided_slice %2 {offsets = [7, 0], sizes = [1, 128], strides = [1, 1]} : vector<8x128xf32> to vector<1x128xf32>
    %92 = vector.broadcast %91 : vector<1x128xf32> to vector<2x128xf32>
    %93 = arith.addf %90, %92 : vector<2x128xf32>
    %c0_36 = arith.constant 0 : index
    %c0_37 = arith.constant 0 : index
    %94 = vector.load %arg6[%c0_36, %c0_37] : memref<2x128xf32, #tpu.memory_space<vmem>>, vector<2x128xf32>
    tpu.vector_store %arg6[%c0_36, %c0_37], %93 {strides = array<i32>} : memref<2x128xf32, #tpu.memory_space<vmem>>, vector<2x128xf32>,
    return
  }
  func.func @transform_0(%arg0: i32) -> (i32, i32) {
    %c0_i32 = arith.constant 0 : i32
    %c0_i32_0 = arith.constant 0 : i32
    return %arg0, %c0_i32 : i32, i32
  }
  func.func @transform_1(%arg0: i32) -> (i32, i32) {
    %c0_i32 = arith.constant 0 : i32
    %c0_i32_0 = arith.constant 0 : i32
    %c0_i32_1 = arith.constant 0 : i32
    return %c0_i32, %c0_i32_0 : i32, i32
  }
  func.func @transform_2(%arg0: i32) -> (i32, i32, i32) {
    %c0_i32 = arith.constant 0 : i32
    %c0_i32_0 = arith.constant 0 : i32
    %c0_i32_1 = arith.constant 0 : i32
    %c0_i32_2 = arith.constant 0 : i32
    return %c0_i32, %c0_i32_0, %c0_i32_1 : i32, i32, i32
  }
  func.func @transform_3(%arg0: i32) -> (i32, i32, i32) {
    %c0_i32 = arith.constant 0 : i32
    %c0_i32_0 = arith.constant 0 : i32
    %c0_i32_1 = arith.constant 0 : i32
    %c0_i32_2 = arith.constant 0 : i32
    return %c0_i32, %c0_i32_0, %c0_i32_1 : i32, i32, i32
  }
  func.func @transform_4(%arg0: i32) -> (i32, i32) {
    %c0_i32 = arith.constant 0 : i32
    %c0_i32_0 = arith.constant 0 : i32
    %c0_i32_1 = arith.constant 0 : i32
    return %c0_i32, %c0_i32_0 : i32, i32
  }
  func.func @transform_5(%arg0: i32) -> (i32, i32) {
    %c0_i32 = arith.constant 0 : i32
    %c0_i32_0 = arith.constant 0 : i32
    return %arg0, %c0_i32 : i32, i32
  }
}

</mosaic_0001>

<bundles_post_ra>
// kernel: mlp_network_forward.1
= control target key start
LH: loop header
LB: loop body
LE: loop exit
PB: predicated region body
PF: predicated region fallthrough
CT: control target
= control target key end

     0   :  { %10 = vsyncpa [#allocation3], 0  ;;  %s2442_s0 = inlined_call_operand.vmem [shape: f32[2,1024], index: 0, kind: input, shape index: {}]   ;;  %s2443_s1 = inlined_call_operand.hbm [shape: bf16[1024,128], index: 1, kind: input, shape index: {}]   ;;  %s2444_s2 = inlined_call_operand.hbm [shape: bf16[4,128,128], index: 2, kind: input, shape index: {}]   ;;  %s2445_s3 = inlined_call_operand.hbm [shape: bf16[3,128,128], index: 3, kind: input, shape index: {}]   ;;  %s2446_s4 = inlined_call_operand.vmem [shape: f32[8,128], index: 4, kind: input, shape index: {}]   ;;  %s2447_s5 = inlined_call_operand.vmem [shape: f32[2,128], index: 5, kind: output, shape index: {}]  }
   0x1   :  { %11 = vsyncpa [#allocation5], 0  ;;  %s2241_s18 = smov [#allocation4]   ;;  %s2242_s20 = smov [#allocation2]  }
   0x2   :  { %s31_s19 = sshll.u32 %s2241_s18, 4  ;;  %s19_s21 = sshll.u32 %s2242_s20, 4  ;;  %s32_s19 = int_to_ptr.vmem [resolvable:$true] %s31_s19  ;;  %s2279_s21 = int_to_ptr.vmem [resolvable:$true] %s19_s21 }
   0x3   :  { %s2171_s24 = scalar_lea.hbm %s2444_s2, 4096 }
   0x4   :  { %p2172_p0 = scmp.ne.s32.totalorder %s2444_s2, %s2171_s24  ;;  %p2175_p1 = scmp.lt.u32.totalorder %s2171_s24, %s2444_s2 }
   0x6   :  { %p2177_p2 = pnand %p2175_p1, %p2172_p0 }
   0x8   :  { %2180 = shalt.err (!%p2177_p2)
}
   0x9   :  { %s2181_s29 = scalar_lea.vmem %s32_s19, 4096  ;;  %p2186_p4 = scmp.lt.s32.totalorder %s32_s19, %s32_s19 }
   0xa   :  { %p2182_p3 = scmp.ne.s32.totalorder %s32_s19, %s2181_s29  ;;  %p2187_p5 = scmp.lt.s32.totalorder %s2181_s29, %s2181_s29 }
   0xc   :  { %p2188_p6 = por %p2187_p5, %p2186_p4 }
   0xe   :  { %p2189_p7 = pnand %p2188_p6, %p2182_p3 }
  0x10   :  { %2192 = shalt.err (!%p2189_p7)
}
  0x11   :  { %s2243_s30 = smov 64   ;;  %s2244_s6 = smov 4  }
  0x12   :  { %37 = dma.hbm_to_vmem [thread:$0]  %s2444_s2, 4096, %s32_s19, [#allocation5], %s2243_s30, %s2243_s30, %s2244_s6  }
  0x13   :  { %s2193_s11 = scalar_lea.hbm %s2443_s1, 8192 }
  0x14   :  { %p2194_p8 = scmp.ne.s32.totalorder %s2443_s1, %s2193_s11  ;;  %p2197_p9 = scmp.lt.u32.totalorder %s2193_s11, %s2443_s1 }
  0x16   :  { %p2199_p10 = pnand %p2197_p9, %p2194_p8 }
  0x18   :  { %2202 = shalt.err (!%p2199_p10)
}
  0x19   :  { %s2203_s16 = scalar_lea.vmem %s2279_s21, 8192  ;;  %p2208_p12 = scmp.lt.s32.totalorder %s2279_s21, %s2279_s21 }
  0x1a   :  { %p2204_p11 = scmp.ne.s32.totalorder %s2279_s21, %s2203_s16  ;;  %p2209_p13 = scmp.lt.s32.totalorder %s2203_s16, %s2203_s16 }
  0x1c   :  { %p2210_p0 = por %p2209_p13, %p2208_p12 }
  0x1e   :  { %p2211_p1 = pnand %p2210_p0, %p2204_p11 }
  0x20   :  { %2214 = shalt.err (!%p2211_p1)
}
  0x21   :  { %25 = dma.hbm_to_vmem [thread:$0]  %s2443_s1, 8192, %s2279_s21, [#allocation3], %s2243_s30, %s2243_s30, %s2244_s6  }
  0x22   :  { %s2245_s18 = smov [#allocation6]   ;;  %s2215_s23 = scalar_lea.hbm %s2445_s3, 3072 }
  0x23   :  { %s43_s19 = sshll.u32 %s2245_s18, 4  ;;  %p2216_p2 = scmp.ne.s32.totalorder %s2445_s3, %s2215_s23  ;;  %s44_s19 = int_to_ptr.vmem [resolvable:$true] %s43_s19 }
  0x24   :  { %p2219_p3 = scmp.lt.u32.totalorder %s2215_s23, %s2445_s3 }
  0x26   :  { %p2221_p4 = pnand %p2219_p3, %p2216_p2 }
  0x28   :  { %2224 = shalt.err (!%p2221_p4)
}
  0x29   :  { %s2225_s28 = scalar_lea.vmem %s44_s19, 3072  ;;  %p2230_p6 = scmp.lt.s32.totalorder %s44_s19, %s44_s19 }
  0x2a   :  { %p2226_p5 = scmp.ne.s32.totalorder %s44_s19, %s2225_s28  ;;  %p2231_p7 = scmp.lt.s32.totalorder %s2225_s28, %s2225_s28 }
  0x2c   :  { %p2232_p8 = por %p2231_p7, %p2230_p6 }
  0x2e   :  { %p2233_p9 = pnand %p2232_p8, %p2226_p5 }
  0x30   :  { %2236 = shalt.err (!%p2233_p9)
}
  0x31   :  { %49 = dma.hbm_to_vmem [thread:$0]  %s2445_s3, 3072, %s44_s19, [#allocation5], %s2243_s30, %s2243_s30, %s2244_s6  }
  0x32   :  { %2237 = dma.done.wait [#allocation3], 8192  }
  0x33   :  { %2238 = vsyncadd [#allocation3], 4294959104 }
  0x34   :  { %2239 = dma.done.wait [#allocation5], 7168  }
  0x35   :  { %2240 = vsyncadd [#allocation5], 4294960128  ;;  %v2029_v0 = vld [vmem:[#allocation2 + $0x40] sm:$0xff]   ;;  %v2033_v4 = vld [vmem:[#allocation2 + $0x48] sm:$0xff]   ;;  %v2246_v22 = vmov 1983009808   ;;  %v70_v24 = vlaneseq }
  0x36   :  { %v2030_v1 = vld [vmem:[#allocation2 + $0xc0] sm:$0xff]   ;;  %1730 = vmatprep.subr.bf16.mxu0 %v2029_v0  ;;  %v2034_v5 = vld [vmem:[#allocation2 + $0xc8] sm:$0xff]   ;;  %v2037_v8 = vld [vmem:[#allocation2 + $0x50] sm:$0xff]   ;;  %v68_v23 = vunpack.c.l.s4 %v2246_v22  ;;  %vm2248_vm0 = vmmov 0  }
  0x37   :  { %v2031_v2 = vld [vmem:[#allocation2] sm:$0xff]   ;;  %1752 = vmatprep.subr.bf16.mxu1 %v2030_v1  ;;  %v2035_v6 = vld [vmem:[#allocation2 + $0x8] sm:$0xff]   ;;  %v2038_v9 = vld [vmem:[#allocation2 + $0xd0] sm:$0xff]   ;;  %v2332_v30 = vshrl.u32 %v70_v24, 7 }
  0x38   :  { %v2032_v3 = vld [vmem:[#allocation2 + $0x80] sm:$0xff]   ;;  %1731 = vmatpush3.bf16.msra.mxu0 %v2031_v2  ;;  %v2036_v7 = vld [vmem:[#allocation2 + $0x88] sm:$0xff]   ;;  %v2039_v10 = vld [vmem:[#allocation2 + $0x10] sm:$0xff]   ;;  %v69_v29 = vunpack.c.0.s8 %v68_v23 }
  0x39   :  { %1753 = vmatpush3.bf16.msra.mxu1 %v2032_v3  ;;  %1732 = vmatprep.subr.bf16.mxu0 %v2033_v4  ;;  %v2040_v11 = vld [vmem:[#allocation2 + $0x90] sm:$0xff]   ;;  %v2041_v12 = vld [vmem:[#allocation2 + $0x58] sm:$0xff]   ;;  %v2045_v16 = vld [vmem:[#allocation2 + $0x60] sm:$0xff]  }
  0x3a   :  { %1754 = vmatprep.subr.bf16.mxu1 %v2034_v5  ;;  %v2042_v13 = vld [vmem:[#allocation2 + $0xd8] sm:$0xff]   ;;  %v2046_v17 = vld [vmem:[#allocation2 + $0xe0] sm:$0xff]   ;;  %v2049_v20 = vld [vmem:[#allocation2 + $0x68] sm:$0xff]   ;;  %v2335_v35 = vsub.s32 %v69_v29, %v2332_v30 }
  0x3b   :  { %v2043_v14 = vld [vmem:[#allocation2 + $0x18] sm:$0xff]   ;;  %v2047_v18 = vld [vmem:[#allocation2 + $0x20] sm:$0xff]   ;;  %v2050_v21 = vld [vmem:[#allocation2 + $0xe8] sm:$0xff]  }
  0x3c   :  { %1733 = vmatpush3.bf16.msra.mxu0 %v2035_v6  ;;  %v2044_v15 = vld [vmem:[#allocation2 + $0x98] sm:$0xff]   ;;  %v2048_v19 = vld [vmem:[#allocation2 + $0xa0] sm:$0xff]   ;;  %v2051_v25 = vld [vmem:[#allocation2 + $0x28] sm:$0xff]  }
  0x3d   :  { %1755 = vmatpush3.bf16.msra.mxu1 %v2036_v7  ;;  %1734 = vmatprep.subr.bf16.mxu0 %v2037_v8  ;;  %v2052_v26 = vld [vmem:[#allocation2 + $0xa8] sm:$0xff]   ;;  %v2053_v27 = vld [vmem:[#allocation2 + $0x70] sm:$0xff]   ;;  %v2057_v33 = vld [vmem:[#allocation2 + $0x78] sm:$0xff]  }
  0x3e   :  { %1756 = vmatprep.subr.bf16.mxu1 %v2038_v9  ;;  %v2054_v28 = vld [vmem:[#allocation2 + $0xf0] sm:$0xff]   ;;  %v2058_v34 = vld [vmem:[#allocation2 + $0xf8] sm:$0xff]   ;;  %v62_v38 = vld [vmem:[%s2442_s0] sm:$0xff] }
  0x3f   :  { %v2055_v31 = vld [vmem:[#allocation2 + $0x30] sm:$0xff]   ;;  %v2059_v36 = vld [vmem:[#allocation2 + $0x38] sm:$0xff]   ;;  %v73_v39 = vrot.slane %v62_v38, %v2335_v35  ;;  %v66_v40 = vcombine.high %v62_v38, %v62_v38  ;;  %v2062_v41 = vld [vmem:[#allocation2 + $0x140] sm:$0xff]  }
  0x40   :  { %1735 = vmatpush3.bf16.msra.mxu0 %v2039_v10  ;;  %v2056_v32 = vld [vmem:[#allocation2 + $0xb0] sm:$0xff]   ;;  %v2060_v37 = vld [vmem:[#allocation2 + $0xb8] sm:$0xff]   ;;  %v2063_v42 = vld [vmem:[#allocation2 + $0x1c0] sm:$0xff]  }
  0x41   :  { %1757 = vmatpush3.bf16.msra.mxu1 %v2040_v11  ;;  %1736 = vmatprep.subr.bf16.mxu0 %v2041_v12  ;;  %v81_v43 = vcombine.high %v73_v39, %v73_v39  ;;  %v80_v44 = vrot.slane %v66_v40, %v2335_v35  ;;  %v108_v45 = vpack.c.bf16 %v73_v39, %v73_v39  ;;  %v2064_v46 = vld [vmem:[#allocation2 + $0x100] sm:$0xff]   ;;  %v2066_v51 = vld [vmem:[#allocation2 + $0x148] sm:$0xff]   ;;  %v2070_v56 = vld [vmem:[#allocation2 + $0x150] sm:$0xff]  }
  0x42   :  { %1758 = vmatprep.subr.bf16.mxu1 %v2042_v13  ;;  %v2065_v49 = vld [vmem:[#allocation2 + $0x180] sm:$0xff]   ;;  %v2067_v53 = vld [vmem:[#allocation2 + $0x1c8] sm:$0xff]   ;;  %v2071_v57 = vld [vmem:[#allocation2 + $0x1d0] sm:$0xff]  }
  0x43   :  { %v109_v47 = vpack.c.bf16 %v81_v43, %v81_v43  ;;  %v82_v48 = vcombine.high %v80_v44, %v80_v44  ;;  %v110_v50 = vpack.c.bf16 %v80_v44, %v80_v44  ;;  %v2068_v54 = vld [vmem:[#allocation2 + $0x108] sm:$0xff]   ;;  %v2072_v58 = vld [vmem:[#allocation2 + $0x110] sm:$0xff]   ;;  %v2074_v60 = vld [vmem:[#allocation2 + $0x158] sm:$0xff]  }
  0x44   :  { %1737 = vmatpush3.bf16.msra.mxu0 %v2043_v14  ;;  %v2069_v55 = vld [vmem:[#allocation2 + $0x188] sm:$0xff]   ;;  %v2073_v59 = vld [vmem:[#allocation2 + $0x190] sm:$0xff]   ;;  %v2075_v61 = vld [vmem:[#allocation2 + $0x1d8] sm:$0xff]  }
  0x45   :  { %1759 = vmatpush3.bf16.msra.mxu1 %v2044_v15  ;;  %1738 = vmatprep.subr.bf16.mxu0 %v2045_v16  ;;  %v111_v52 = vpack.c.bf16 %v82_v48, %v82_v48  ;;  %v2076_v62 = vld [vmem:[#allocation2 + $0x118] sm:$0xff]   ;;  %v2078_v0 = vld [vmem:[#allocation2 + $0x160] sm:$0xff]   ;;  %v2082_v4 = vld [vmem:[#allocation2 + $0x168] sm:$0xff]  }
  0x46   :  { %1760 = vmatprep.subr.bf16.mxu1 %v2046_v17  ;;  %665 = vmatprep.mubr.bf16.mxu0 %v109_v47  ;;  %v2077_v63 = vld [vmem:[#allocation2 + $0x198] sm:$0xff]   ;;  %v2079_v1 = vld [vmem:[#allocation2 + $0x1e0] sm:$0xff]   ;;  %v2083_v5 = vld [vmem:[#allocation2 + $0x1e8] sm:$0xff]  }
  0x47   :  { %705 = vmatprep.mubr.bf16.mxu1 %v111_v52  ;;  %v2080_v2 = vld [vmem:[#allocation2 + $0x120] sm:$0xff]   ;;  %v2084_v6 = vld [vmem:[#allocation2 + $0x128] sm:$0xff]   ;;  %v2086_v8 = vld [vmem:[#allocation2 + $0x170] sm:$0xff]  }
  0x48   :  { %1739 = vmatpush3.bf16.msra.mxu0 %v2047_v18  ;;  %v2081_v3 = vld [vmem:[#allocation2 + $0x1a0] sm:$0xff]   ;;  %v2085_v7 = vld [vmem:[#allocation2 + $0x1a8] sm:$0xff]   ;;  %v2087_v9 = vld [vmem:[#allocation2 + $0x1f0] sm:$0xff]  }
  0x49   :  { %1761 = vmatpush3.bf16.msra.mxu1 %v2048_v19  ;;  %1740 = vmatprep.subr.bf16.mxu0 %v2049_v20  ;;  %v2088_v10 = vld [vmem:[#allocation2 + $0x130] sm:$0xff]   ;;  %v2090_v12 = vld [vmem:[#allocation2 + $0x178] sm:$0xff]   ;;  %v63_v15 = vld [vmem:[%s2442_s0 + $0x8] sm:$0xff] }
  0x4a   :  { %1762 = vmatprep.subr.bf16.mxu1 %v2050_v21  ;;  %v2089_v11 = vld [vmem:[#allocation2 + $0x1b0] sm:$0xff]   ;;  %v2091_v13 = vld [vmem:[#allocation2 + $0x1f8] sm:$0xff]   ;;  %v90_v17 = vrot.slane %v63_v15, %v2335_v35  ;;  %v83_v18 = vcombine.high %v63_v15, %v63_v15  ;;  %v2096_v29 = vld [vmem:[#allocation4 + $0x8] sm:$0xff]  }
  0x4b   :  { %v2092_v14 = vld [vmem:[#allocation2 + $0x138] sm:$0xff]   ;;  %v2365_v38 = vld [vmem:[%s2446_s4] sm:$0xff] }
  0x4c   :  { %1741 = vmatpush3.bf16.msra.mxu0 %v2051_v25  ;;  %v2093_v16 = vld [vmem:[#allocation2 + $0x1b8] sm:$0xff]   ;;  %v98_v19 = vcombine.high %v90_v17, %v90_v17  ;;  %v97_v20 = vrot.slane %v83_v18, %v2335_v35  ;;  %v112_v21 = vpack.c.bf16 %v90_v17, %v90_v17  ;;  %v2101_v35 = vld [vmem:[#allocation4 + $0x30] sm:$0xff]  }
  0x4d   :  { %1763 = vmatpush3.bf16.msra.mxu1 %v2052_v26  ;;  %1742 = vmatprep.subr.bf16.mxu0 %v2053_v27  ;;  %v2095_v27 = vld [vmem:[#allocation4] sm:$0xff]  }
  0x4e   :  { %1764 = vmatprep.subr.bf16.mxu1 %v2054_v28  ;;  %v113_v22 = vpack.c.bf16 %v98_v19, %v98_v19  ;;  %v99_v23 = vcombine.high %v97_v20, %v97_v20  ;;  %v114_v25 = vpack.c.bf16 %v97_v20, %v97_v20  ;;  %v2247_v28 = vmov 0.0  }
  0x50   :  { %1743 = vmatpush3.bf16.msra.mxu0 %v2055_v31  ;;  %v115_v26 = vpack.c.bf16 %v99_v23, %v99_v23  ;;  %v2097_v31 = vld [vmem:[#allocation4 + $0x10] sm:$0xff]  }
  0x51   :  { %1765 = vmatpush3.bf16.msra.mxu1 %v2056_v32  ;;  %1744 = vmatprep.subr.bf16.mxu0 %v2057_v33  ;;  %v2098_v32 = vld [vmem:[#allocation4 + $0x18] sm:$0xff]   ;;  %v2099_v33 = vld [vmem:[#allocation4 + $0x20] sm:$0xff]  }
  0x52   :  { %1766 = vmatprep.subr.bf16.mxu1 %v2058_v34  ;;  %v2100_v34 = vld [vmem:[#allocation4 + $0x28] sm:$0xff]  }
  0x54   :  { %1745 = vmatpush3.bf16.msra.mxu0 %v2059_v36  ;;  %v2102_v36 = vld [vmem:[#allocation4 + $0x38] sm:$0xff]  }
  0x55   :  { %1767 = vmatpush3.bf16.msra.mxu1 %v2060_v37  ;;  %1774 = vmatprep.subr.bf16.mxu0 %v2062_v41  ;;  %v247_v37 = vsub.s32 0, %v2332_v30 }
  0x56   :  { %1796 = vmatprep.subr.bf16.mxu1 %v2063_v42 }
  0x57   :  { %666 = vmatmul.mubr.bf16.vlgmr.msra.gmra.mrb[0].mxu0 %v108_v45  ;;  %v248_v40 = vrot.slane %v2365_v38, %v247_v37  ;;  %v2118_v37 = vld [vmem:[#allocation4 + $0xb8] sm:$0xff]  }
  0x58   :  { %1775 = vmatpush3.bf16.msra.mxu0 %v2064_v46  ;;  %706 = vmatmul.mubr.bf16.vlgmr.msra.gmra.mrb[0].mxu1 %v110_v50 }
  0x59   :  { %1776 = vmatprep.subr.bf16.mxu0 %v2066_v51  ;;  %1797 = vmatpush3.bf16.msra.mxu1 %v2065_v49 }
  0x5a   :  { %1798 = vmatprep.subr.bf16.mxu1 %v2067_v53  ;;  %745 = vmatprep.mubr.bf16.mxu0 %v113_v22 }
  0x5b   :  { %785 = vmatprep.mubr.bf16.mxu1 %v115_v26 }
  0x5c   :  { %1777 = vmatpush3.bf16.msra.mxu0 %v2068_v54 }
  0x5d   :  { %1778 = vmatprep.subr.bf16.mxu0 %v2070_v56  ;;  %1799 = vmatpush3.bf16.msra.mxu1 %v2069_v55 }
  0x5e   :  { %1800 = vmatprep.subr.bf16.mxu1 %v2071_v57 }
  0x60   :  { %1779 = vmatpush3.bf16.msra.mxu0 %v2072_v58 }
  0x61   :  { %1780 = vmatprep.subr.bf16.mxu0 %v2074_v60  ;;  %1801 = vmatpush3.bf16.msra.mxu1 %v2073_v59 }
  0x62   :  { %1802 = vmatprep.subr.bf16.mxu1 %v2075_v61 }
  0x64   :  { %1781 = vmatpush3.bf16.msra.mxu0 %v2076_v62 }
  0x65   :  { %1782 = vmatprep.subr.bf16.mxu0 %v2078_v0  ;;  %1803 = vmatpush3.bf16.msra.mxu1 %v2077_v63 }
  0x66   :  { %1804 = vmatprep.subr.bf16.mxu1 %v2079_v1 }
  0x68   :  { %1783 = vmatpush3.bf16.msra.mxu0 %v2080_v2 }
  0x69   :  { %1784 = vmatprep.subr.bf16.mxu0 %v2082_v4  ;;  %1805 = vmatpush3.bf16.msra.mxu1 %v2081_v3 }
  0x6a   :  { %1806 = vmatprep.subr.bf16.mxu1 %v2083_v5 }
  0x6c   :  { %1785 = vmatpush3.bf16.msra.mxu0 %v2084_v6  ;;  %v2103_v6 = vld [vmem:[#allocation4 + $0x40] sm:$0xff]  }
  0x6d   :  { %1786 = vmatprep.subr.bf16.mxu0 %v2086_v8  ;;  %1807 = vmatpush3.bf16.msra.mxu1 %v2085_v7  ;;  %v2104_v7 = vld [vmem:[#allocation4 + $0x48] sm:$0xff]   ;;  %v2105_v8 = vld [vmem:[#allocation4 + $0x50] sm:$0xff]  }
  0x6e   :  { %1808 = vmatprep.subr.bf16.mxu1 %v2087_v9  ;;  %v2106_v9 = vld [vmem:[#allocation4 + $0x58] sm:$0xff]  }
  0x70   :  { %1787 = vmatpush3.bf16.msra.mxu0 %v2088_v10  ;;  %v2107_v10 = vld [vmem:[#allocation4 + $0x60] sm:$0xff]  }
  0x71   :  { %1788 = vmatprep.subr.bf16.mxu0 %v2090_v12  ;;  %1809 = vmatpush3.bf16.msra.mxu1 %v2089_v11  ;;  %v2108_v11 = vld [vmem:[#allocation4 + $0x68] sm:$0xff]   ;;  %v2109_v12 = vld [vmem:[#allocation4 + $0x70] sm:$0xff]  }
  0x72   :  { %1810 = vmatprep.subr.bf16.mxu1 %v2091_v13  ;;  %v2110_v13 = vld [vmem:[#allocation4 + $0x78] sm:$0xff]  }
  0x74   :  { %1789 = vmatpush3.bf16.msra.mxu0 %v2092_v14  ;;  %v819_v14 = vsub.s32 1, %v2332_v30 }
  0x75   :  { %1811 = vmatpush3.bf16.msra.mxu1 %v2093_v16  ;;  %1881 = vmatprep.subr.bf16.mxu0 %v2247_v28 }
  0x76   :  { %1901 = vmatprep.subr.bf16.mxu1 %v2247_v28  ;;  %v820_v15 = vrot.slane %v2365_v38, %v819_v14 }
  0x77   :  { %746 = vmatmul.mubr.bf16.vlgmr.msra.gmra.mrb[4].mxu0 %v112_v21 }
  0x78   :  { %786 = vmatmul.mubr.bf16.vlgmr.msra.gmra.mrb[4].mxu1 %v114_v25  ;;  %1882 = vmatpush3.bf16.msra.mxu0 %v2095_v27 }
  0x79   :  { %1883 = vmatprep.subr.bf16.mxu0 %v2247_v28  ;;  %1897 = vmatprep.mubr.msk.bf16.mxu0 %vm2248_vm0, %v2247_v28 }
  0x7a   :  { %1917 = vmatprep.mubr.msk.bf16.mxu1 %vm2248_vm0, %v2247_v28  ;;  %1902 = vmatpush3.bf16.msra.mxu1 %v2103_v6 }
  0x7b   :  { %1903 = vmatprep.subr.bf16.mxu1 %v2247_v28 }
  0x7c   :  { %1884 = vmatpush3.bf16.msra.mxu0 %v2096_v29  ;;  %v2111_v29 = vld [vmem:[#allocation4 + $0x80] sm:$0xff]  }
  0x7d   :  { %1885 = vmatprep.subr.bf16.mxu0 %v2247_v28 }
  0x7e   :  { %1904 = vmatpush3.bf16.msra.mxu1 %v2104_v7 }
  0x7f   :  { %1905 = vmatprep.subr.bf16.mxu1 %v2247_v28 }
  0x80   :  { %1886 = vmatpush3.bf16.msra.mxu0 %v2097_v31  ;;  %v2112_v31 = vld [vmem:[#allocation4 + $0x88] sm:$0xff]  }
  0x81   :  { %1887 = vmatprep.subr.bf16.mxu0 %v2247_v28 }
  0x82   :  { %1906 = vmatpush3.bf16.msra.mxu1 %v2105_v8 }
  0x83   :  { %1907 = vmatprep.subr.bf16.mxu1 %v2247_v28 }
  0x84   :  { %1888 = vmatpush3.bf16.msra.mxu0 %v2098_v32  ;;  %v2113_v32 = vld [vmem:[#allocation4 + $0x90] sm:$0xff]  }
  0x85   :  { %1889 = vmatprep.subr.bf16.mxu0 %v2247_v28 }
  0x86   :  { %1908 = vmatpush3.bf16.msra.mxu1 %v2106_v9 }
  0x87   :  { %1909 = vmatprep.subr.bf16.mxu1 %v2247_v28 }
  0x88   :  { %1890 = vmatpush3.bf16.msra.mxu0 %v2099_v33  ;;  %v2114_v33 = vld [vmem:[#allocation4 + $0x98] sm:$0xff]  }
  0x89   :  { %1891 = vmatprep.subr.bf16.mxu0 %v2247_v28 }
  0x8a   :  { %1910 = vmatpush3.bf16.msra.mxu1 %v2107_v10 }
  0x8b   :  { %1911 = vmatprep.subr.bf16.mxu1 %v2247_v28 }
  0x8c   :  { %1892 = vmatpush3.bf16.msra.mxu0 %v2100_v34  ;;  %v2115_v34 = vld [vmem:[#allocation4 + $0xa0] sm:$0xff]  }
  0x8d   :  { %1893 = vmatprep.subr.bf16.mxu0 %v2247_v28 }
  0x8e   :  { %1912 = vmatpush3.bf16.msra.mxu1 %v2108_v11 }
  0x8f   :  { %1913 = vmatprep.subr.bf16.mxu1 %v2247_v28 }
  0x90   :  { %1894 = vmatpush3.bf16.msra.mxu0 %v2101_v35  ;;  %v2116_v35 = vld [vmem:[#allocation4 + $0xa8] sm:$0xff]  }
  0x91   :  { %1895 = vmatprep.subr.bf16.mxu0 %v2247_v28 }
  0x92   :  { %1914 = vmatpush3.bf16.msra.mxu1 %v2109_v12 }
  0x93   :  { %1915 = vmatprep.subr.bf16.mxu1 %v2247_v28 }
  0x94   :  { %1896 = vmatpush3.bf16.msra.mxu0 %v2102_v36  ;;  %v2117_v36 = vld [vmem:[#allocation4 + $0xb0] sm:$0xff]  }
  0x95   :  { %1921 = vmatprep.subr.bf16.mxu0 %v2247_v28 }
  0x96   :  { %1916 = vmatpush3.bf16.msra.mxu1 %v2110_v13 }
  0x97   :  { %1941 = vmatprep.subr.bf16.mxu1 %v2247_v28 }
 0x12a   :  { %v1746_v39 = vpop.f32.mrb[0].mxu0 }
 0x12b   :  { %v1747_v41 = vpop.f32.mrb[1].mxu0  ;;  %v1768_v42 = vpop.f32.mrb[0].mxu1 }
 0x12c   :  { %v1748_v43 = vadd.f32 %v1747_v41, %v1746_v39  ;;  %v1749_v44 = vpop.f32.mrb[2].mxu0  ;;  %v1769_v45 = vpop.f32.mrb[1].mxu1  ;;  %v936_v39 = vsub.s32 2, %v2332_v30 }
 0x12d   :  { %v1750_v46 = vpop.f32.mrb[3].mxu0  ;;  %v1770_v48 = vadd.f32 %v1769_v45, %v1768_v42  ;;  %v1771_v49 = vpop.f32.mrb[2].mxu1 }
 0x12e   :  { %v668_v47 = vadd.f32 %v1748_v43, %v248_v40  ;;  %v1772_v50 = vpop.f32.mrb[3].mxu1  ;;  %v937_v40 = vrot.slane %v2365_v38, %v936_v39  ;;  %v2145_v39 = vld [vmem:[#allocation6 + $0x90] sm:$0xff]  }
 0x130   :  { %v708_v51 = vadd.f32 %v1770_v48, %v668_v47 }
 0x14a   :  { %v1790_v52 = vpop.f32.mrb[4].mxu0 }
 0x14b   :  { %v1791_v53 = vpop.f32.mrb[5].mxu0  ;;  %v1812_v54 = vpop.f32.mrb[4].mxu1 }
 0x14c   :  { %v1792_v55 = vadd.f32 %v1791_v53, %v1790_v52  ;;  %v1793_v56 = vpop.f32.mrb[6].mxu0  ;;  %v1813_v57 = vpop.f32.mrb[5].mxu1  ;;  %v2119_v52 = vld [vmem:[#allocation4 + $0xc0] sm:$0xff]   ;;  %v2120_v53 = vld [vmem:[#allocation4 + $0xc8] sm:$0xff]  }
 0x14d   :  { %v1794_v58 = vpop.f32.mrb[7].mxu0  ;;  %v1814_v60 = vadd.f32 %v1813_v57, %v1812_v54  ;;  %v1815_v61 = vpop.f32.mrb[6].mxu1  ;;  %v2121_v54 = vld [vmem:[#allocation4 + $0xd0] sm:$0xff]   ;;  %v2123_v56 = vld [vmem:[#allocation4 + $0xe0] sm:$0xff]   ;;  %v2124_v57 = vld [vmem:[#allocation4 + $0xe8] sm:$0xff]  }
 0x14e   :  { %v748_v59 = vadd.f32 %v1792_v55, %v708_v51  ;;  %v1816_v62 = vpop.f32.mrb[7].mxu1  ;;  %v2122_v55 = vld [vmem:[#allocation4 + $0xd8] sm:$0xff]   ;;  %v2125_v58 = vld [vmem:[#allocation4 + $0xf0] sm:$0xff]   ;;  %v2128_v61 = vld [vmem:[#allocation6 + $0x8] sm:$0xff]  }
 0x14f   :  { %v2129_v62 = vld [vmem:[#allocation6 + $0x10] sm:$0xff]  }
 0x150   :  { %v788_v63 = vadd.f32 %v1814_v60, %v748_v59  ;;  %v2126_v59 = vld [vmem:[#allocation4 + $0xf8] sm:$0xff]   ;;  %v2127_v60 = vld [vmem:[#allocation6] sm:$0xff]  }
 0x152   :  { %v1670_v0 = vmul.f32 -1.442695, %v788_v63 }
 0x154   :  { %2151 = vpow2.f32 %v1670_v0  ;;  %v2131_v0 = vld [vmem:[#allocation6 + $0x20] sm:$0xff]  }
 0x15e   :  { %v2152_v1 = vpop.eup %2151 }
 0x15f   :  { %v796_v2 = vadd.f32 1.0, %v2152_v1  ;;  %v2132_v1 = vld [vmem:[#allocation6 + $0x28] sm:$0xff]  }
 0x161   :  { %2153 = vrcp.f32 %v796_v2  ;;  %v2133_v2 = vld [vmem:[#allocation6 + $0x30] sm:$0xff]  }
 0x16b   :  { %v2154_v3 = vpop.eup %2153 }
 0x16c   :  { %v799_v4 = vmul.f32 %v2154_v3, %v788_v63  ;;  %v2130_v63 = vld [vmem:[#allocation6 + $0x18] sm:$0xff]   ;;  %v1053_v3 = vsub.s32 3, %v2332_v30 }
 0x16e   :  { %v800_v5 = vpack.c.bf16 %v799_v4, %v799_v4  ;;  %v1054_v4 = vrot.slane %v2365_v38, %v1053_v3 }
 0x170   :  { %1898 = vmatmul.mubr.bf16.vlgmr.msra.gmra.mrb[8].mxu0 %v800_v5 }
 0x171   :  { %1937 = vmatprep.mubr.msk.bf16.mxu0 %vm2248_vm0, %v2247_v28  ;;  %1922 = vmatpush3.bf16.msra.mxu0 %v2111_v29 }
 0x172   :  { %1923 = vmatprep.subr.bf16.mxu0 %v2247_v28 }
 0x175   :  { %1924 = vmatpush3.bf16.msra.mxu0 %v2112_v31 }
 0x176   :  { %1925 = vmatprep.subr.bf16.mxu0 %v2247_v28 }
 0x179   :  { %1926 = vmatpush3.bf16.msra.mxu0 %v2113_v32  ;;  %v2139_v32 = vld [vmem:[#allocation6 + $0x60] sm:$0xff]  }
 0x17a   :  { %1927 = vmatprep.subr.bf16.mxu0 %v2247_v28 }
 0x17d   :  { %1928 = vmatpush3.bf16.msra.mxu0 %v2114_v33  ;;  %v2140_v33 = vld [vmem:[#allocation6 + $0x68] sm:$0xff]  }
 0x17e   :  { %1929 = vmatprep.subr.bf16.mxu0 %v2247_v28 }
 0x181   :  { %1930 = vmatpush3.bf16.msra.mxu0 %v2115_v34  ;;  %v2141_v34 = vld [vmem:[#allocation6 + $0x70] sm:$0xff]  }
 0x182   :  { %1931 = vmatprep.subr.bf16.mxu0 %v2247_v28 }
 0x185   :  { %1932 = vmatpush3.bf16.msra.mxu0 %v2116_v35  ;;  %v2142_v35 = vld [vmem:[#allocation6 + $0x78] sm:$0xff]  }
 0x186   :  { %1933 = vmatprep.subr.bf16.mxu0 %v2247_v28 }
 0x189   :  { %1934 = vmatpush3.bf16.msra.mxu0 %v2117_v36  ;;  %v2143_v36 = vld [vmem:[#allocation6 + $0x80] sm:$0xff]  }
 0x18a   :  { %1935 = vmatprep.subr.bf16.mxu0 %v2247_v28 }
 0x18d   :  { %1936 = vmatpush3.bf16.msra.mxu0 %v2118_v37  ;;  %v2144_v37 = vld [vmem:[#allocation6 + $0x88] sm:$0xff]  }
 0x18e   :  { %1961 = vmatprep.subr.bf16.mxu0 %v2247_v28 }
 0x243   :  { %v903_v16 = vpop.f32.mrb[8].mxu0 }
 0x244   :  { %v904_v17 = vadd.f32 %v903_v16, %v820_v15  ;;  %v1899_v18 = vpop.f32.mrb[9].mxu0  ;;  %v2134_v16 = vld [vmem:[#allocation6 + $0x38] sm:$0xff]  }
 0x245   :  { %v906_v19 = vpop.f32.mrb[10].mxu0  ;;  %v2136_v18 = vld [vmem:[#allocation6 + $0x48] sm:$0xff]  }
 0x246   :  { %v1679_v20 = vmul.f32 -1.442695, %v904_v17  ;;  %v1900_v21 = vpop.f32.mrb[11].mxu0  ;;  %v2137_v19 = vld [vmem:[#allocation6 + $0x50] sm:$0xff]  }
 0x247   :  { %v1170_v21 = vsub.s32 4, %v2332_v30 }
 0x248   :  { %2155 = vpow2.f32 %v1679_v20  ;;  %v2138_v20 = vld [vmem:[#allocation6 + $0x58] sm:$0xff]  }
 0x252   :  { %v2156_v22 = vpop.eup %2155 }
 0x253   :  { %v912_v23 = vadd.f32 1.0, %v2156_v22  ;;  %v1171_v22 = vrot.slane %v2365_v38, %v1170_v21 }
 0x255   :  { %2157 = vrcp.f32 %v912_v23 }
 0x25f   :  { %v2158_v25 = vpop.eup %2157 }
 0x260   :  { %v915_v26 = vmul.f32 %v2158_v25, %v904_v17  ;;  %v2135_v17 = vld [vmem:[#allocation6 + $0x40] sm:$0xff]  }
 0x262   :  { %v916_v27 = vpack.c.bf16 %v915_v26, %v915_v26 }
 0x264   :  { %1918 = vmatmul.mubr.bf16.vlgmr.msra.gmra.mrb[8].mxu1 %v916_v27 }
 0x265   :  { %1957 = vmatprep.mubr.msk.bf16.mxu1 %vm2248_vm0, %v2247_v28  ;;  %1942 = vmatpush3.bf16.msra.mxu1 %v2119_v52 }
 0x266   :  { %1943 = vmatprep.subr.bf16.mxu1 %v2247_v28 }
 0x269   :  { %1944 = vmatpush3.bf16.msra.mxu1 %v2120_v53  ;;  %v2147_v53 = vld [vmem:[#allocation6 + $0xa0] sm:$0xff]  }
 0x26a   :  { %1945 = vmatprep.subr.bf16.mxu1 %v2247_v28 }
 0x26d   :  { %1946 = vmatpush3.bf16.msra.mxu1 %v2121_v54  ;;  %v2148_v54 = vld [vmem:[#allocation6 + $0xa8] sm:$0xff]  }
 0x26e   :  { %1947 = vmatprep.subr.bf16.mxu1 %v2247_v28 }
 0x271   :  { %1948 = vmatpush3.bf16.msra.mxu1 %v2122_v55  ;;  %v2149_v55 = vld [vmem:[#allocation6 + $0xb0] sm:$0xff]  }
 0x272   :  { %1949 = vmatprep.subr.bf16.mxu1 %v2247_v28 }
 0x275   :  { %1950 = vmatpush3.bf16.msra.mxu1 %v2123_v56  ;;  %v2150_v56 = vld [vmem:[#allocation6 + $0xb8] sm:$0xff]  }
 0x276   :  { %1951 = vmatprep.subr.bf16.mxu1 %v2247_v28 }
 0x279   :  { %1952 = vmatpush3.bf16.msra.mxu1 %v2124_v57 }
 0x27a   :  { %1953 = vmatprep.subr.bf16.mxu1 %v2247_v28 }
 0x27d   :  { %1954 = vmatpush3.bf16.msra.mxu1 %v2125_v58 }
 0x27e   :  { %1955 = vmatprep.subr.bf16.mxu1 %v2247_v28 }
 0x281   :  { %1956 = vmatpush3.bf16.msra.mxu1 %v2126_v59 }
 0x282   :  { %1981 = vmatprep.subr.bf16.mxu1 %v2247_v28 }
 0x337   :  { %v1020_v41 = vpop.f32.mrb[8].mxu1 }
 0x338   :  { %v1021_v42 = vadd.f32 %v1020_v41, %v937_v40  ;;  %v1919_v43 = vpop.f32.mrb[9].mxu1  ;;  %v2146_v40 = vld [vmem:[#allocation6 + $0x98] sm:$0xff]   ;;  %v1281_v41 = vsub.s32 5, %v2332_v30 }
 0x339   :  { %v1023_v44 = vpop.f32.mrb[10].mxu1 }
 0x33a   :  { %v1688_v45 = vmul.f32 -1.442695, %v1021_v42  ;;  %v1920_v46 = vpop.f32.mrb[11].mxu1 }
 0x33c   :  { %2159 = vpow2.f32 %v1688_v45 }
 0x346   :  { %v2160_v47 = vpop.eup %2159 }
 0x347   :  { %v1029_v48 = vadd.f32 1.0, %v2160_v47 }
 0x349   :  { %2161 = vrcp.f32 %v1029_v48  ;;  %v1261_v48 = vand.u32 127, %v70_v24  ;;  %v1395_v24 = vsub.s32 6, %v2332_v30 }
 0x34b   :  { %vm1371_vm1 = vcmp.lt.s32.totalorder %v1261_v48, 32  ;;  %v1396_v57 = vrot.slane %v2365_v38, %v1395_v24  ;;  %vm1485_vm2 = vcmp.lt.s32.totalorder %v1261_v48, 16 }
 0x353   :  { %v2162_v49 = vpop.eup %2161 }
 0x354   :  { %v1032_v50 = vmul.f32 %v2162_v49, %v1021_v42  ;;  %v1282_v42 = vrot.slane %v2365_v38, %v1281_v41 }
 0x356   :  { %v1033_v51 = vpack.c.bf16 %v1032_v50, %v1032_v50 }
 0x358   :  { %1938 = vmatmul.mubr.bf16.vlgmr.msra.gmra.mrb[12].mxu0 %v1033_v51 }
 0x359   :  { %1977 = vmatprep.mubr.msk.bf16.mxu0 %vm2248_vm0, %v2247_v28  ;;  %1962 = vmatpush3.bf16.msra.mxu0 %v2127_v60 }
 0x35a   :  { %1963 = vmatprep.subr.bf16.mxu0 %v2247_v28 }
 0x35d   :  { %1964 = vmatpush3.bf16.msra.mxu0 %v2128_v61 }
 0x35e   :  { %1965 = vmatprep.subr.bf16.mxu0 %v2247_v28 }
 0x361   :  { %1966 = vmatpush3.bf16.msra.mxu0 %v2129_v62 }
 0x362   :  { %1967 = vmatprep.subr.bf16.mxu0 %v2247_v28 }
 0x365   :  { %1968 = vmatpush3.bf16.msra.mxu0 %v2130_v63 }
 0x366   :  { %1969 = vmatprep.subr.bf16.mxu0 %v2247_v28 }
 0x369   :  { %1970 = vmatpush3.bf16.msra.mxu0 %v2131_v0 }
 0x36a   :  { %1971 = vmatprep.subr.bf16.mxu0 %v2247_v28 }
 0x36d   :  { %1972 = vmatpush3.bf16.msra.mxu0 %v2132_v1 }
 0x36e   :  { %1973 = vmatprep.subr.bf16.mxu0 %v2247_v28 }
 0x371   :  { %1974 = vmatpush3.bf16.msra.mxu0 %v2133_v2 }
 0x372   :  { %1975 = vmatprep.subr.bf16.mxu0 %v2247_v28 }
 0x375   :  { %1976 = vmatpush3.bf16.msra.mxu0 %v2134_v16 }
 0x376   :  { %2001 = vmatprep.subr.bf16.mxu0 %v2247_v28 }
 0x42b   :  { %v1137_v5 = vpop.f32.mrb[12].mxu0 }
 0x42c   :  { %v1138_v6 = vadd.f32 %v1137_v5, %v1054_v4  ;;  %v1939_v7 = vpop.f32.mrb[13].mxu0 }
 0x42d   :  { %v1140_v8 = vpop.f32.mrb[14].mxu0 }
 0x42e   :  { %v1697_v9 = vmul.f32 -1.442695, %v1138_v6  ;;  %v1940_v10 = vpop.f32.mrb[15].mxu0 }
 0x430   :  { %2163 = vpow2.f32 %v1697_v9 }
 0x43a   :  { %v2164_v11 = vpop.eup %2163 }
 0x43b   :  { %v1146_v12 = vadd.f32 1.0, %v2164_v11 }
 0x43d   :  { %2165 = vrcp.f32 %v1146_v12 }
 0x447   :  { %v2166_v13 = vpop.eup %2165 }
 0x448   :  { %v1149_v14 = vmul.f32 %v2166_v13, %v1138_v6 }
 0x44a   :  { %v1150_v15 = vpack.c.bf16 %v1149_v14, %v1149_v14 }
 0x44c   :  { %1958 = vmatmul.mubr.bf16.vlgmr.msra.gmra.mrb[12].mxu1 %v1150_v15 }
 0x44d   :  { %1997 = vmatprep.mubr.msk.bf16.mxu1 %vm2248_vm0, %v2247_v28  ;;  %1982 = vmatpush3.bf16.msra.mxu1 %v2135_v17 }
 0x44e   :  { %1983 = vmatprep.subr.bf16.mxu1 %v2247_v28 }
 0x451   :  { %1984 = vmatpush3.bf16.msra.mxu1 %v2136_v18 }
 0x452   :  { %1985 = vmatprep.subr.bf16.mxu1 %v2247_v28 }
 0x455   :  { %1986 = vmatpush3.bf16.msra.mxu1 %v2137_v19 }
 0x456   :  { %1987 = vmatprep.subr.bf16.mxu1 %v2247_v28 }
 0x459   :  { %1988 = vmatpush3.bf16.msra.mxu1 %v2138_v20 }
 0x45a   :  { %1989 = vmatprep.subr.bf16.mxu1 %v2247_v28 }
 0x45d   :  { %1990 = vmatpush3.bf16.msra.mxu1 %v2139_v32 }
 0x45e   :  { %1991 = vmatprep.subr.bf16.mxu1 %v2247_v28 }
 0x461   :  { %1992 = vmatpush3.bf16.msra.mxu1 %v2140_v33 }
 0x462   :  { %1993 = vmatprep.subr.bf16.mxu1 %v2247_v28 }
 0x465   :  { %1994 = vmatpush3.bf16.msra.mxu1 %v2141_v34 }
 0x466   :  { %1995 = vmatprep.subr.bf16.mxu1 %v2247_v28 }
 0x469   :  { %1996 = vmatpush3.bf16.msra.mxu1 %v2142_v35 }
 0x51f   :  { %v1254_v23 = vpop.f32.mrb[12].mxu1 }
 0x520   :  { %v1255_v25 = vadd.f32 %v1254_v23, %v1171_v22  ;;  %v1959_v26 = vpop.f32.mrb[13].mxu1 }
 0x521   :  { %v1257_v27 = vpop.f32.mrb[14].mxu1 }
 0x522   :  { %v1262_v29 = vpack.c.bf16 %v1255_v25, %v1255_v25  ;;  %v1960_v31 = vpop.f32.mrb[15].mxu1 }
 0x524   :  { %1978 = vmatmul.mubr.bf16.vlgmr.msra.gmra.mrb[16].mxu0 %v1262_v29 }
 0x525   :  { %2017 = vmatprep.mubr.msk.bf16.mxu0 %vm2248_vm0, %v2247_v28  ;;  %2002 = vmatpush3.bf16.msra.mxu0 %v2143_v36 }
 0x526   :  { %2003 = vmatprep.subr.bf16.mxu0 %v2247_v28 }
 0x529   :  { %2004 = vmatpush3.bf16.msra.mxu0 %v2144_v37 }
 0x52a   :  { %2005 = vmatprep.subr.bf16.mxu0 %v2247_v28 }
 0x52d   :  { %2006 = vmatpush3.bf16.msra.mxu0 %v2145_v39 }
 0x52e   :  { %2007 = vmatprep.subr.bf16.mxu0 %v2247_v28 }
 0x531   :  { %2008 = vmatpush3.bf16.msra.mxu0 %v2146_v40 }
 0x532   :  { %2009 = vmatprep.subr.bf16.mxu0 %v2247_v28 }
 0x535   :  { %2010 = vmatpush3.bf16.msra.mxu0 %v2147_v53 }
 0x536   :  { %2011 = vmatprep.subr.bf16.mxu0 %v2247_v28 }
 0x539   :  { %2012 = vmatpush3.bf16.msra.mxu0 %v2148_v54 }
 0x53a   :  { %2013 = vmatprep.subr.bf16.mxu0 %v2247_v28 }
 0x53d   :  { %2014 = vmatpush3.bf16.msra.mxu0 %v2149_v55 }
 0x53e   :  { %2015 = vmatprep.subr.bf16.mxu0 %v2247_v28  ;;  %v1509_v28 = vsub.s32 7, %v2332_v30 }
 0x540   :  { %v1510_v3 = vrot.slane %v2365_v38, %v1509_v28 }
 0x541   :  { %2016 = vmatpush3.bf16.msra.mxu0 %v2150_v56 }
 0x5f7   :  { %v1365_v43 = vpop.f32.mrb[16].mxu0 }
 0x5f8   :  { %v1366_v44 = vadd.f32 %v1365_v43, %v1282_v42  ;;  %v1979_v45 = vpop.f32.mrb[17].mxu0 }
 0x5f9   :  { %v1368_v46 = vpop.f32.mrb[18].mxu0 }
 0x5fa   :  { %2167 = vtanh.f32 %v1366_v44  ;;  %v1980_v47 = vpop.f32.mrb[19].mxu0  ;;  %v1372_v49 = vmax.f32 %v1366_v44, 0.0 }
 0x604   :  { %v2168_v50 = vpop.eup %2167 }
 0x605   :  { %v1374_v51 = vsel %vm1371_vm1, %v1372_v49, %v2168_v50 }
 0x606   :  { %v1375_v52 = vpack.c.bf16 %v1374_v51, %v1374_v51 }
 0x608   :  { %1998 = vmatmul.mubr.bf16.vlgmr.msra.gmra.mrb[16].mxu1 %v1375_v52 }
 0x6db   :  { %v1479_v58 = vpop.f32.mrb[16].mxu1 }
 0x6dc   :  { %v1480_v59 = vadd.f32 %v1479_v58, %v1396_v57  ;;  %v1999_v60 = vpop.f32.mrb[17].mxu1 }
 0x6dd   :  { %v1482_v61 = vpop.f32.mrb[18].mxu1 }
 0x6de   :  { %2169 = vtanh.f32 %v1480_v59  ;;  %v2000_v62 = vpop.f32.mrb[19].mxu1  ;;  %v1486_v63 = vmax.f32 %v1480_v59, 0.0 }
 0x6e8   :  { %v2170_v0 = vpop.eup %2169 }
 0x6e9   :  { %v1488_v1 = vsel %vm1485_vm2, %v1486_v63, %v2170_v0 }
 0x6ea   :  { %v1489_v2 = vpack.c.bf16 %v1488_v1, %v1488_v1 }
 0x6ec   :  { %2018 = vmatmul.mubr.bf16.vlgmr.msra.gmra.mrb[20].mxu0 %v1489_v2 }
 0x7bf   :  { %v1593_v4 = vpop.f32.mrb[20].mxu0 }
 0x7c0   :  { %v1594_v5 = vadd.f32 %v1593_v4, %v1510_v3  ;;  %v2019_v6 = vpop.f32.mrb[21].mxu0 }
 0x7c1   :  { %v1596_v7 = vpop.f32.mrb[22].mxu0 }
 0x7c2   :  { %1599 = vst [vmem:[%s2447_s5] sm:$0x3] %v1594_v5  ;;  %v2020_v8 = vpop.f32.mrb[23].mxu0 }
 0x7c3   :  { %1604 = vsyncpa [#allocation3], 1 }
 0x7c4   :  { %1605 = vsyncpa [#allocation5], 1 }

</bundles_post_ra>
